<compile_context>
chip_gen: v7x
topology: tpu7x:2x2x1
jax: 0.10.0
libtpu: 0.0.40
codegen_flags: <defaults>
</compile_context>

<pallas_src>
import jax
import jax.numpy as jnp
from jax.experimental import pallas as pl
from jax.experimental.pallas import tpu as pltpu


# ---------------------------------------------------------------------------
# Fused kernel body: per batch element, L x (graph conv + Linear + GLU),
# crop vertices N:2N, running max accumulated directly in the output block.
# ---------------------------------------------------------------------------
def _make_kernel(num_layers, n_crop, has_rest):
    def kernel(adj_ref, x_ref, w0_ref, *rest_refs):
        if has_rest:
            w_rest_ref, bias_ref, out_ref = rest_refs
        else:
            bias_ref, out_ref = rest_refs
            w_rest_ref = None

        a = adj_ref[...]                                    # (V, V), resident
        x = x_ref[0]                                        # (V, C) activations (f32)
        bias_all = bias_ref[...].astype(jnp.float32)        # (L, 2F), tiny

        for l in range(num_layers):
            w = w0_ref[...] if l == 0 else w_rest_ref[l - 1]            # (C_l, 2F)
            # Graph convolution on the MXU, f32 accumulation.
            h = jnp.dot(a, x.astype(a.dtype),
                        preferred_element_type=jnp.float32)             # (V, C_l)
            # Linear layer as ONE matmul with a 2F-wide lane dim, + bias.
            y = jnp.dot(h.astype(w.dtype), w[...] if l == 0 else w,
                        preferred_element_type=jnp.float32)             # (V, 2F)
            y = y + bias_all[l:l + 1, :]
            f = w.shape[-1] // 2
            # GLU kept in f32 (v5e has no bf16 VPU/EUP; VPU work hides under MXU).
            x = y[:, :f] * jax.nn.sigmoid(y[:, f:])                     # (V, F)
            # Crop vertices N:2N, fold into the running max held in the output
            # VMEM block -> single HBM writeback at end of the grid step.
            cur = x[n_crop:2 * n_crop, :].astype(out_ref.dtype)         # (N, F)
            if l == 0:
                out_ref[0] = cur
            else:
                out_ref[0] = jnp.maximum(out_ref[0], cur)

    return kernel


def stsgcm_forward(adj, x_vbc, weights, biases, *, compute_dtype=jnp.float32):
    """STSGCM forward (activation='GLU').

    adj:     (V, V)        with V = 4N
    x_vbc:   (V, B, C)     PyTorch layout (vertices, batch, features)
    weights: list of (C_l, 2F) == fc.weight.T per layer
    biases:  list of (2F,)     == fc.bias per layer
    returns  (N, B, F)     PyTorch layout
    """
    V, B, C = x_vbc.shape
    N = V // 4
    L = len(weights)
    F = weights[-1].shape[1] // 2
    out_dtype = x_vbc.dtype

    # One batch-major transpose outside the kernel; the per-layer permutes of
    # the PyTorch module are fused away entirely.
    x_bvc = jnp.transpose(x_vbc, (1, 0, 2))                  # (B, V, C)

    adj_c = adj.astype(compute_dtype)
    w0 = weights[0].astype(compute_dtype)                    # (C, 2F)
    has_rest = L > 1

    args = [adj_c, x_bvc, w0]
    in_specs = [
        pl.BlockSpec((V, V), lambda b: (0, 0)),              # adj: VMEM-resident
        pl.BlockSpec((1, V, C), lambda b: (b, 0, 0)),        # x: streamed per batch
        pl.BlockSpec(w0.shape, lambda b: (0, 0)),            # layer-0 weight: resident
    ]
    if has_rest:
        w_rest = jnp.stack([w.astype(compute_dtype) for w in weights[1:]], 0)  # (L-1, F, 2F)
        args.append(w_rest)
        in_specs.append(pl.BlockSpec(w_rest.shape, lambda b: (0, 0, 0)))
    bias_all = jnp.stack(list(biases), 0).astype(jnp.float32)                   # (L, 2F)
    args.append(bias_all)
    in_specs.append(pl.BlockSpec(bias_all.shape, lambda b: (0, 0)))

    kernel = _make_kernel(L, N, has_rest)

    out_bnf = pl.pallas_call(
        kernel,
        out_shape=jax.ShapeDtypeStruct((B, N, F), out_dtype),
        grid=(B,),
        in_specs=in_specs,
        out_specs=pl.BlockSpec((1, N, F), lambda b: (b, 0, 0)),
        compiler_params=pltpu.CompilerParams(
            dimension_semantics=("parallel",)),               # shard batch over TCs (v7x)
    )(*args)

    return jnp.transpose(out_bnf, (1, 0, 2))                  # (N, B, F)


# ---------------------------------------------------------------------------
# Pure-JAX reference mirroring the PyTorch code exactly (for validation).
# ---------------------------------------------------------------------------
def stsgcm_reference(adj, x_vbc, weights, biases):
    V = x_vbc.shape[0]
    N = V // 4
    x = x_vbc
    outs = []
    for w_t, b in zip(weights, biases):
        x = jnp.einsum('ij,jbc->ibc', adj, x)    # (V, B, C)
        x = jnp.transpose(x, (1, 0, 2))          # (B, V, C)
        y = x @ w_t + b                          # (B, V, 2F)
        Fo = w_t.shape[1] // 2
        lhs, rhs = y[..., :Fo], y[..., Fo:]
        x = lhs * jax.nn.sigmoid(rhs)            # GLU
        x = jnp.transpose(x, (1, 0, 2))          # (V, B, F)
        outs.append(x[N:2 * N][None])
    cat = jnp.concatenate(outs, axis=0)
    return jnp.max(cat, axis=0)                  # (N, B, F)


if __name__ == "__main__":
    # Small shapes consistent with the module: 4N vertices, batch B, C features.
    N_VERT = 4                  # vertices per time-group
    V = 4 * N_VERT              # 16 total vertices
    B = 2                       # batch
    C_IN = 16                   # input feature dim
    FILTERS = [16, 16, 16]      # 3 GCN layers, activation='GLU' (equal, as cat requires)

    key = jax.random.PRNGKey(0)
    k_adj, k_x, k_w = jax.random.split(key, 3)

    adj = jax.random.normal(k_adj, (V, V), dtype=jnp.float32) * 0.3
    x = jax.random.normal(k_x, (V, B, C_IN), dtype=jnp.float32)

    # Deterministic parameter init (nn.Linear(num_of_features, 2*num_of_filter)).
    weights, biases = [], []
    c_in = C_IN
    for f in FILTERS:
        k_w, kw, kb = jax.random.split(k_w, 3)
        weights.append(jax.random.normal(kw, (c_in, 2 * f), dtype=jnp.float32) * 0.1)
        biases.append(jax.random.normal(kb, (2 * f,), dtype=jnp.float32) * 0.1)
        c_in = f

    # f32 matmul operands here so the strict 1e-4 check holds at test shapes.
    # TODO(synk): use compute_dtype=jnp.bfloat16 (f32 accumulate) for
    # production-sized STSGCN shapes; loosen tolerance accordingly.
    out = stsgcm_forward(adj, x, weights, biases, compute_dtype=jnp.float32)
    out = jax.block_until_ready(out)

    ref = jax.block_until_ready(stsgcm_reference(adj, x, weights, biases))

    assert out.shape == (N_VERT, B, FILTERS[-1]), out.shape
    assert jnp.allclose(out, ref, atol=1e-4, rtol=1e-4), (
        float(jnp.max(jnp.abs(out - ref))))

    print("KERNEL_OK")
</pallas_src>

<mosaic_0001>
module attributes {stable_mosaic.version = 11 : i64} {
  func.func @kernel(%arg0: i32, %arg1: memref<16x16xf32, #tpu.memory_space<vmem>>, %arg2: memref<1x16x16xf32, #tpu.memory_space<vmem>>, %arg3: memref<16x32xf32, #tpu.memory_space<vmem>>, %arg4: memref<2x16x32xf32, #tpu.memory_space<vmem>>, %arg5: memref<3x32xf32, #tpu.memory_space<vmem>>, %arg6: memref<1x4x16xf32, #tpu.memory_space<vmem>>) attributes {dimension_semantics = [#tpu.dimension_semantics<parallel>], iteration_bounds = array<i64: 2>, scalar_prefetch = 0 : i64, scratch_operands = 0 : i64, tpu.core_type = #tpu.core_type<tc>, window_params = [{pipeline_mode = #tpu.pipeline_mode<synchronous>, transform_indices = @transform_0, window_bounds = array<i64: 16, 16>}, {transform_indices = @transform_1, window_bounds = array<i64: 1, 16, 16>}, {pipeline_mode = #tpu.pipeline_mode<synchronous>, transform_indices = @transform_2, window_bounds = array<i64: 16, 32>}, {pipeline_mode = #tpu.pipeline_mode<synchronous>, transform_indices = @transform_3, window_bounds = array<i64: 2, 16, 32>}, {pipeline_mode = #tpu.pipeline_mode<synchronous>, transform_indices = @transform_4, window_bounds = array<i64: 3, 32>}, {transform_indices = @transform_5, window_bounds = array<i64: 1, 4, 16>}]} {
    %c0 = arith.constant 0 : index
    %c0_0 = arith.constant 0 : index
    %0 = vector.load %arg1[%c0, %c0_0] : memref<16x16xf32, #tpu.memory_space<vmem>>, vector<16x16xf32>
    %c0_1 = arith.constant 0 : index
    %c0_2 = arith.constant 0 : index
    %c0_3 = arith.constant 0 : index
    %1 = vector.load %arg2[%c0_1, %c0_2, %c0_3] : memref<1x16x16xf32, #tpu.memory_space<vmem>>, vector<1x16x16xf32>
    %2 = vector.shape_cast %1 : vector<1x16x16xf32> to vector<16x16xf32>
    %c0_4 = arith.constant 0 : index
    %c0_5 = arith.constant 0 : index
    %3 = vector.load %arg5[%c0_4, %c0_5] : memref<3x32xf32, #tpu.memory_space<vmem>>, vector<3x32xf32>
    %c0_6 = arith.constant 0 : index
    %c0_7 = arith.constant 0 : index
    %4 = vector.load %arg3[%c0_6, %c0_7] : memref<16x32xf32, #tpu.memory_space<vmem>>, vector<16x32xf32>
    %cst = arith.constant dense<0.000000e+00> : vector<16x16xf32>
    %5 = tpu.matmul %0, %2, %cst {dimension_numbers = #tpu.dot_dimension_numbers<[1], [0], [0], [1], [0, 0, 1, 1], [], []>} : vector<16x16xf32>, vector<16x16xf32>, vector<16x16xf32> -> vector<16x16xf32>
    %cst_8 = arith.constant dense<0.000000e+00> : vector<16x32xf32>
    %6 = tpu.matmul %5, %4, %cst_8 {dimension_numbers = #tpu.dot_dimension_numbers<[1], [0], [0], [1], [0, 0, 1, 1], [], []>} : vector<16x16xf32>, vector<16x32xf32>, vector<16x32xf32> -> vector<16x32xf32>
    %7 = vector.extract_strided_slice %3 {offsets = [0, 0], sizes = [1, 32], strides = [1, 1]} : vector<3x32xf32> to vector<1x32xf32>
    %8 = vector.broadcast %7 : vector<1x32xf32> to vector<16x32xf32>
    %9 = arith.addf %6, %8 : vector<16x32xf32>
    %10 = vector.extract_strided_slice %9 {offsets = [0, 0], sizes = [16, 16], strides = [1, 1]} : vector<16x32xf32> to vector<16x16xf32>
    %11 = vector.extract_strided_slice %9 {offsets = [0, 16], sizes = [16, 16], strides = [1, 1]} : vector<16x32xf32> to vector<16x16xf32>
    %12 = arith.negf %11 : vector<16x16xf32>
    %13 = math.exp %12 : vector<16x16xf32>
    %cst_9 = arith.constant 1.000000e+00 : f32
    %14 = vector.broadcast %cst_9 : f32 to vector<16x16xf32>
    %15 = arith.addf %14, %13 : vector<16x16xf32>
    %16 = arith.divf %14, %15 : vector<16x16xf32>
    %17 = arith.mulf %10, %16 : vector<16x16xf32>
    %18 = vector.extract_strided_slice %17 {offsets = [4, 0], sizes = [4, 16], strides = [1, 1]} : vector<16x16xf32> to vector<4x16xf32>
    %c0_10 = arith.constant 0 : index
    %c0_11 = arith.constant 0 : index
    %c0_12 = arith.constant 0 : index
    %19 = vector.load %arg6[%c0_10, %c0_11, %c0_12] : memref<1x4x16xf32, #tpu.memory_space<vmem>>, vector<1x4x16xf32>
    %20 = vector.shape_cast %19 : vector<1x4x16xf32> to vector<4x16xf32>
    %21 = vector.shape_cast %18 : vector<4x16xf32> to vector<1x4x16xf32>
    tpu.vector_store %arg6[%c0_10, %c0_11, %c0_12], %21 {strides = array<i32>} : memref<1x4x16xf32, #tpu.memory_space<vmem>>, vector<1x4x16xf32>,
    %c0_13 = arith.constant 0 : index
    %c0_14 = arith.constant 0 : index
    %c0_15 = arith.constant 0 : index
    %22 = vector.load %arg4[%c0_13, %c0_14, %c0_15] : memref<2x16x32xf32, #tpu.memory_space<vmem>>, vector<1x16x32xf32>
    %23 = vector.shape_cast %22 : vector<1x16x32xf32> to vector<16x32xf32>
    %cst_16 = arith.constant dense<0.000000e+00> : vector<16x16xf32>
    %24 = tpu.matmul %0, %17, %cst_16 {dimension_numbers = #tpu.dot_dimension_numbers<[1], [0], [0], [1], [0, 0, 1, 1], [], []>} : vector<16x16xf32>, vector<16x16xf32>, vector<16x16xf32> -> vector<16x16xf32>
    %cst_17 = arith.constant dense<0.000000e+00> : vector<16x32xf32>
    %25 = tpu.matmul %24, %23, %cst_17 {dimension_numbers = #tpu.dot_dimension_numbers<[1], [0], [0], [1], [0, 0, 1, 1], [], []>} : vector<16x16xf32>, vector<16x32xf32>, vector<16x32xf32> -> vector<16x32xf32>
    %26 = vector.extract_strided_slice %3 {offsets = [1, 0], sizes = [1, 32], strides = [1, 1]} : vector<3x32xf32> to vector<1x32xf32>
    %27 = vector.broadcast %26 : vector<1x32xf32> to vector<16x32xf32>
    %28 = arith.addf %25, %27 : vector<16x32xf32>
    %29 = vector.extract_strided_slice %28 {offsets = [0, 0], sizes = [16, 16], strides = [1, 1]} : vector<16x32xf32> to vector<16x16xf32>
    %30 = vector.extract_strided_slice %28 {offsets = [0, 16], sizes = [16, 16], strides = [1, 1]} : vector<16x32xf32> to vector<16x16xf32>
    %31 = arith.negf %30 : vector<16x16xf32>
    %32 = math.exp %31 : vector<16x16xf32>
    %cst_18 = arith.constant 1.000000e+00 : f32
    %33 = vector.broadcast %cst_18 : f32 to vector<16x16xf32>
    %34 = arith.addf %33, %32 : vector<16x16xf32>
    %35 = arith.divf %33, %34 : vector<16x16xf32>
    %36 = arith.mulf %29, %35 : vector<16x16xf32>
    %37 = vector.extract_strided_slice %36 {offsets = [4, 0], sizes = [4, 16], strides = [1, 1]} : vector<16x16xf32> to vector<4x16xf32>
    %c0_19 = arith.constant 0 : index
    %c0_20 = arith.constant 0 : index
    %c0_21 = arith.constant 0 : index
    %38 = vector.load %arg6[%c0_19, %c0_20, %c0_21] : memref<1x4x16xf32, #tpu.memory_space<vmem>>, vector<1x4x16xf32>
    %39 = vector.shape_cast %38 : vector<1x4x16xf32> to vector<4x16xf32>
    %40 = arith.maximumf %39, %37 : vector<4x16xf32>
    %c0_22 = arith.constant 0 : index
    %c0_23 = arith.constant 0 : index
    %c0_24 = arith.constant 0 : index
    %41 = vector.load %arg6[%c0_22, %c0_23, %c0_24] : memref<1x4x16xf32, #tpu.memory_space<vmem>>, vector<1x4x16xf32>
    %42 = vector.shape_cast %41 : vector<1x4x16xf32> to vector<4x16xf32>
    %43 = vector.shape_cast %40 : vector<4x16xf32> to vector<1x4x16xf32>
    tpu.vector_store %arg6[%c0_22, %c0_23, %c0_24], %43 {strides = array<i32>} : memref<1x4x16xf32, #tpu.memory_space<vmem>>, vector<1x4x16xf32>,
    %c1 = arith.constant 1 : index
    %c0_25 = arith.constant 0 : index
    %c0_26 = arith.constant 0 : index
    %44 = vector.load %arg4[%c1, %c0_25, %c0_26] : memref<2x16x32xf32, #tpu.memory_space<vmem>>, vector<1x16x32xf32>
    %45 = vector.shape_cast %44 : vector<1x16x32xf32> to vector<16x32xf32>
    %cst_27 = arith.constant dense<0.000000e+00> : vector<16x16xf32>
    %46 = tpu.matmul %0, %36, %cst_27 {dimension_numbers = #tpu.dot_dimension_numbers<[1], [0], [0], [1], [0, 0, 1, 1], [], []>} : vector<16x16xf32>, vector<16x16xf32>, vector<16x16xf32> -> vector<16x16xf32>
    %cst_28 = arith.constant dense<0.000000e+00> : vector<16x32xf32>
    %47 = tpu.matmul %46, %45, %cst_28 {dimension_numbers = #tpu.dot_dimension_numbers<[1], [0], [0], [1], [0, 0, 1, 1], [], []>} : vector<16x16xf32>, vector<16x32xf32>, vector<16x32xf32> -> vector<16x32xf32>
    %48 = vector.extract_strided_slice %3 {offsets = [2, 0], sizes = [1, 32], strides = [1, 1]} : vector<3x32xf32> to vector<1x32xf32>
    %49 = vector.broadcast %48 : vector<1x32xf32> to vector<16x32xf32>
    %50 = arith.addf %47, %49 : vector<16x32xf32>
    %51 = vector.extract_strided_slice %50 {offsets = [0, 0], sizes = [16, 16], strides = [1, 1]} : vector<16x32xf32> to vector<16x16xf32>
    %52 = vector.extract_strided_slice %50 {offsets = [0, 16], sizes = [16, 16], strides = [1, 1]} : vector<16x32xf32> to vector<16x16xf32>
    %53 = arith.negf %52 : vector<16x16xf32>
    %54 = math.exp %53 : vector<16x16xf32>
    %cst_29 = arith.constant 1.000000e+00 : f32
    %55 = vector.broadcast %cst_29 : f32 to vector<16x16xf32>
    %56 = arith.addf %55, %54 : vector<16x16xf32>
    %57 = arith.divf %55, %56 : vector<16x16xf32>
    %58 = arith.mulf %51, %57 : vector<16x16xf32>
    %59 = vector.extract_strided_slice %58 {offsets = [4, 0], sizes = [4, 16], strides = [1, 1]} : vector<16x16xf32> to vector<4x16xf32>
    %c0_30 = arith.constant 0 : index
    %c0_31 = arith.constant 0 : index
    %c0_32 = arith.constant 0 : index
    %60 = vector.load %arg6[%c0_30, %c0_31, %c0_32] : memref<1x4x16xf32, #tpu.memory_space<vmem>>, vector<1x4x16xf32>
    %61 = vector.shape_cast %60 : vector<1x4x16xf32> to vector<4x16xf32>
    %62 = arith.maximumf %61, %59 : vector<4x16xf32>
    %c0_33 = arith.constant 0 : index
    %c0_34 = arith.constant 0 : index
    %c0_35 = arith.constant 0 : index
    %63 = vector.load %arg6[%c0_33, %c0_34, %c0_35] : memref<1x4x16xf32, #tpu.memory_space<vmem>>, vector<1x4x16xf32>
    %64 = vector.shape_cast %63 : vector<1x4x16xf32> to vector<4x16xf32>
    %65 = vector.shape_cast %62 : vector<4x16xf32> to vector<1x4x16xf32>
    tpu.vector_store %arg6[%c0_33, %c0_34, %c0_35], %65 {strides = array<i32>} : memref<1x4x16xf32, #tpu.memory_space<vmem>>, vector<1x4x16xf32>,
    return
  }
  func.func @transform_0(%arg0: i32) -> (i32, i32) {
    %c0_i32 = arith.constant 0 : i32
    %c0_i32_0 = arith.constant 0 : i32
    %c0_i32_1 = arith.constant 0 : i32
    return %c0_i32, %c0_i32_0 : i32, i32
  }
  func.func @transform_1(%arg0: i32) -> (i32, i32, i32) {
    %c0_i32 = arith.constant 0 : i32
    %c0_i32_0 = arith.constant 0 : i32
    %c0_i32_1 = arith.constant 0 : i32
    return %arg0, %c0_i32, %c0_i32_0 : i32, i32, i32
  }
  func.func @transform_2(%arg0: i32) -> (i32, i32) {
    %c0_i32 = arith.constant 0 : i32
    %c0_i32_0 = arith.constant 0 : i32
    %c0_i32_1 = arith.constant 0 : i32
    return %c0_i32, %c0_i32_0 : i32, i32
  }
  func.func @transform_3(%arg0: i32) -> (i32, i32, i32) {
    %c0_i32 = arith.constant 0 : i32
    %c0_i32_0 = arith.constant 0 : i32
    %c0_i32_1 = arith.constant 0 : i32
    %c0_i32_2 = arith.constant 0 : i32
    return %c0_i32, %c0_i32_0, %c0_i32_1 : i32, i32, i32
  }
  func.func @transform_4(%arg0: i32) -> (i32, i32) {
    %c0_i32 = arith.constant 0 : i32
    %c0_i32_0 = arith.constant 0 : i32
    %c0_i32_1 = arith.constant 0 : i32
    return %c0_i32, %c0_i32_0 : i32, i32
  }
  func.func @transform_5(%arg0: i32) -> (i32, i32, i32) {
    %c0_i32 = arith.constant 0 : i32
    %c0_i32_0 = arith.constant 0 : i32
    %c0_i32_1 = arith.constant 0 : i32
    return %arg0, %c0_i32, %c0_i32_0 : i32, i32, i32
  }
}

</mosaic_0001>

<bundles_post_ra>
// kernel: tpu_custom_call.1
= control target key start
LH: loop header
LB: loop body
LE: loop exit
PB: predicated region body
PF: predicated region fallthrough
CT: control target
= control target key end

     0   :  { %s1738_s0 = inlined_call_operand.hbm [shape: f32[16,16], index: 0, kind: input, shape index: {}]   ;;  %s1739_s1 = inlined_call_operand.hbm [shape: f32[2,16,16], index: 1, kind: input, shape index: {}]   ;;  %s1740_s2 = inlined_call_operand.hbm [shape: f32[16,32], index: 2, kind: input, shape index: {}]   ;;  %s1741_s3 = inlined_call_operand.hbm [shape: f32[2,16,32], index: 3, kind: input, shape index: {}]   ;;  %s1742_s4 = inlined_call_operand.vmem [shape: f32[3,32], index: 4, kind: input, shape index: {}]   ;;  %s1743_s5 = inlined_call_operand.hbm [shape: f32[2,4,16], index: 5, kind: output, shape index: {}]  }
   0x1   :  { %1751 = sst [smem:[#allocation18_spill]] %s1740_s2 }
   0x2   :  { %10 = vsyncpa [#allocation3], 0 }
   0x3   :  { %11 = vsyncpa [#allocation6], 0 }
   0x4   :  { %13 = vsyncpa [#allocation6 + $0x1], 0 }
   0x5   :  { %14 = vsyncpa [#allocation9], 0 }
   0x6   :  { %15 = vsyncpa [#allocation4], 0 }
   0x7   :  { %17 = vsyncpa [#allocation4 + $0x1], 0  ;;  %s1429_s18 = smov 0   ;;  %s1431_s19 = smov 0  }
   0x8   :  { %s1433_s20 = smov 0   ;;  %s1435_s21 = smov 0  }
   0x9 LB: > { %s1450_s22 = sadd.s32 4294967295, %s1389_s21   ;;  %s970_s23 = sadd.s32 4294967294, %s1389_s21   ;;  %s1389_s21 = sphi %s1435_s21, %s1777_s21   ;;  %s1385_s20 = sphi %s1433_s20, %s1781_s20   ;;  %s1381_s19 = sphi %s1431_s19, %s1780_s19   ;;  %s1377_s18 = sphi %s1429_s18, %s1779_s18  }
   0xa   : > { %s1454_s24 = sadd.s32 1, %s1389_s21   ;;  %s51_s25 = sadd.s32 1, %s1385_s20 }
   0xb   : > { %1752 = sst [smem:[#allocation16_spill]] %s1454_s24  ;;  %s48_s26 = ssub.s32 %s1389_s21, %s1454_s24 }
   0xc   : > { %p58_p0 = scmp.ne.s32.totalorder %s1385_s20, %s1381_s19  ;;  %p49_p1 = scmp.eq.s32.totalorder %s48_s26, 0 }
   0xd   : > { %p59_p2 = scmp.eq.s32.totalorder %s1389_s21, 0  ;;  %p64_p3 = scmp.ne.s32.totalorder %s1381_s19, %s1377_s18 }
   0xe   : > { %p1745_p4 = scmp.eq.s32.totalorder %s1450_s22, 0  ;;  %p151_p7 = scmp.eq.s32.totalorder %s1450_s22, 1 }
   0xf   : > { %s1466_s27 = scalar_select %p49_p1, %s1385_s20, %s51_s25  }
  0x10   : > { %p1468_p5 = por %p59_p2, %p58_p0  ;;  %p1474_p6 = por %p1745_p4, %p64_p3 }
  0x11   : > { %1753 = sst [smem:[#allocation17_spill]] %s1466_s27  ;;  %p157_p8 = scmp.eq.s32.totalorder %s970_s23, 1 }
  0x12   : > { %s1754_s28 = scalar_select %p1468_p5, 1, 0 }
  0x13   : > { %s1755_s29 = scalar_select %p1474_p6, 1, 0 }
  0x14   : > { %p971_p9 = scmp.ge.s32.totalorder %s1389_s21, 1  ;;  %p164_p10 = scmp.lt.s32.totalorder %s1389_s21, 3 }
  0x15   : > { %p1481_p11 = por %p151_p7, %p58_p0  ;;  %p1485_p12 = por %p157_p8, %p64_p3 }
  0x16   : > { %p1489_p13 = pnand %p971_p9, %p164_p10  ;;  %s1391_s8 = smov [#allocation7]  }
  0x17   : > { %s1756_s30 = scalar_select %p1481_p11, 1, 0 }
  0x18   : > { %s1757_s6 = scalar_select %p1485_p12, 1, 0 }
  0x19   : > { %s1758_s7 = scalar_select %p1489_p13, 1, 0 }
  0x1a   : > { %p1113_p1 = pneg %p1489_p13  ;;  %s189_s9 = sshll.u32 %s1391_s8, 4  ;;  %s190_s9 = int_to_ptr.vmem [resolvable:$true] %s189_s9 }
  0x1b   : > { %s1392_s11 = smov [#allocation2]   ;;  %s1760_s2 = sld [smem:[#allocation18_spill]] }
  0x1c   : > { %p1498_p6 = pnand %p1113_p1, %p1745_p4  ;;  %s176_s12 = sshll.u32 %s1392_s11, 4  ;;  %s177_s12 = int_to_ptr.vmem [resolvable:$true] %s176_s12 }
  0x1e   : > { %p1511_p7 = pneg %p1498_p6 }
  0x21   : > { %s1197_s15 = scalar_lea.hbm %s1760_s2, 256 }
  0x22   : > { %p1198_p3 = scmp.ne.s32.totalorder %s1760_s2, %s1197_s15  ;;  %p1204_p10 = scmp.lt.u32.totalorder %s1197_s15, %s1760_s2 }
  0x24   : > { %p1200_p8 = pnand %p1511_p7, %p1198_p3 }
  0x26   : > { %p1201_p9 = pneg %p1200_p8 }
  0x28   : > { %p1206_p1 = pnand %p1204_p10, %p1201_p9 }
  0x2a   : > { %1209 = shalt.err (!%p1206_p1)
}
  0x2b   : > { %s1210_s8 = scalar_lea.vmem %s190_s9, 256  ;;  %p1218_p12 = scmp.lt.s32.totalorder %s190_s9, %s190_s9 }
  0x2c   : > { %p1211_p2 = scmp.ne.s32.totalorder %s190_s9, %s1210_s8  ;;  %p1219_p11 = scmp.lt.s32.totalorder %s1210_s8, %s1210_s8 }
  0x2e   : > { %p1213_p4 = pnand %p1211_p2, %p1511_p7  ;;  %p1220_p13 = por %p1219_p11, %p1218_p12 }
  0x30   : > { %p1214_p0 = pneg %p1213_p4 }
  0x32   : > { %p1221_p5 = pnand %p1220_p13, %p1214_p0 }
  0x34   : > { %1224 = shalt.err (!%p1221_p5)
}
  0x35   : > { %s1393_s11 = smov 128   ;;  %s1394_s13 = smov 8  }
  0x36   : > { %1119 = dma.hbm_to_vmem [thread:$0]  (!%p1498_p6), %s1760_s2, 256, %s190_s9, [#allocation6], %s1393_s11, %s1393_s11, %s1394_s13  }
  0x37   : > { %p1762_p4 = scmp.ne.s32.totalorder %s1754_s28, 0  ;;  %p1763_p2 = scmp.lt.s32.totalorder %s1389_s21, 2 }
  0x38   : > { %s1225_s26 = scalar_lea.hbm %s1738_s0, 256 }
  0x39   : > { %p1534_p3 = pnand %p1763_p2, %p1762_p4  ;;  %p1226_p5 = scmp.ne.s32.totalorder %s1738_s0, %s1225_s26 }
  0x3a   : > { %p1232_p13 = scmp.lt.u32.totalorder %s1225_s26, %s1738_s0 }
  0x3b   : > { %s1764_s16 = scalar_select %p1534_p3, 1, 0 }
  0x3c   : > { %p1228_p11 = pnand %p1226_p5, %p1511_p7 }
  0x3e   : > { %p1229_p12 = pneg %p1228_p11 }
  0x40   : > { %p1234_p0 = pnand %p1232_p13, %p1229_p12 }
  0x42   : > { %1237 = shalt.err (!%p1234_p0)
}
  0x43   : > { %s1238_s28 = scalar_lea.vmem %s177_s12, 256  ;;  %p1246_p1 = scmp.lt.s32.totalorder %s177_s12, %s177_s12 }
  0x44   : > { %p1239_p8 = scmp.ne.s32.totalorder %s177_s12, %s1238_s28  ;;  %p1247_p4 = scmp.lt.s32.totalorder %s1238_s28, %s1238_s28 }
  0x46   : > { %p1241_p9 = pnand %p1239_p8, %p1511_p7  ;;  %p1248_p2 = por %p1247_p4, %p1246_p1 }
  0x48   : > { %p1242_p10 = pneg %p1241_p9 }
  0x4a   : > { %p1249_p3 = pnand %p1248_p2, %p1242_p10 }
  0x4c   : > { %1252 = shalt.err (!%p1249_p3)
}
  0x4d   : > { %1116 = dma.hbm_to_vmem [thread:$0]  (!%p1498_p6), %s1738_s0, 256, %s177_s12, [#allocation3], %s1393_s11, %s1393_s11, %s1394_s13  }
  0x4e   : > { %s1395_s17 = smov [#allocation8]   ;;  %s219_s26 = sand.u32 1, %s1389_s21  }
  0x4f   : > { %s202_s25 = sshll.u32 %s1395_s17, 4  ;;  %s1253_s9 = scalar_lea.hbm %s1741_s3, 512  ;;  %s203_s25 = int_to_ptr.vmem [resolvable:$true] %s202_s25 }
  0x50   : > { %p1254_p3 = scmp.ne.s32.totalorder %s1741_s3, %s1253_s9  ;;  %p1260_p12 = scmp.lt.u32.totalorder %s1253_s9, %s1741_s3 }
  0x52   : > { %p1256_p5 = pnand %p1254_p3, %p1511_p7 }
  0x54   : > { %p1257_p11 = pneg %p1256_p5 }
  0x56   : > { %p1262_p13 = pnand %p1260_p12, %p1257_p11 }
  0x58   : > { %1265 = shalt.err (!%p1262_p13)
}
  0x59   : > { %s1266_s12 = scalar_lea.vmem %s203_s25, 512  ;;  %p1274_p10 = scmp.lt.s32.totalorder %s203_s25, %s203_s25 }
  0x5a   : > { %p1267_p0 = scmp.ne.s32.totalorder %s203_s25, %s1266_s12  ;;  %p1275_p1 = scmp.lt.s32.totalorder %s1266_s12, %s1266_s12 }
  0x5c   : > { %p1269_p8 = pnand %p1267_p0, %p1511_p7  ;;  %p1276_p4 = por %p1275_p1, %p1274_p10 }
  0x5e   : > { %p1270_p9 = pneg %p1269_p8 }
  0x60   : > { %p1277_p2 = pnand %p1276_p4, %p1270_p9 }
  0x62   : > { %1280 = shalt.err (!%p1277_p2)
}
  0x63   : > { %1122 = dma.hbm_to_vmem [thread:$0]  (!%p1498_p6), %s1741_s3, 512, %s203_s25, [#allocation9], %s1393_s11, %s1393_s11, %s1394_s13  }
  0x64   : > { %s221_s23 = sand.u32 1, %s1385_s20   ;;  %s1006_s15 = sshll.u32 %s1389_s21, 8 }
  0x65   : > { %s976_s17 = sshll.u32 %s221_s23, 4  ;;  %s1586_s9 = scalar_lea.hbm %s1739_s1, %s1006_s15 }
  0x66   : > { %s223_s10 = scalar_lea.vmem [#allocation5], %s976_s17  ;;  %s1590_s27 = scalar_lea.sflag [#allocation6], %s219_s26 }
  0x67   : > { %s230_s28 = sshll.u32 %s223_s10, 4  ;;  %s1281_s12 = scalar_lea.hbm %s1586_s9, 256  ;;  %s1588_s28 = int_to_ptr.vmem [resolvable:$true] %s230_s28 }
  0x68   : > { %p1282_p6 = scmp.ne.s32.totalorder %s1586_s9, %s1281_s12  ;;  %p1765_p7 = scmp.ne.s32.totalorder %s1764_s16, 0 }
  0x69   : > { %s1286_s24 = scalar_lea.hbm %s1739_s1, 512  ;;  %p1287_p12 = scmp.lt.u32.totalorder %s1586_s9, %s1739_s1 }
  0x6a   : > { %p1283_p3 = pneg %p1765_p7  ;;  %p1288_p13 = scmp.lt.u32.totalorder %s1286_s24, %s1281_s12 }
  0x6b   : > { %p1290_p8 = scmp.lt.u32.totalorder %s1281_s12, %s1586_s9 }
  0x6c   : > { %p1284_p5 = pnand %p1283_p3, %p1282_p6  ;;  %p1289_p0 = por %p1288_p13, %p1287_p12 }
  0x6e   : > { %p1285_p11 = pneg %p1284_p5  ;;  %p1291_p9 = por %p1290_p8, %p1289_p0 }
  0x70   : > { %p1292_p10 = pnand %p1291_p9, %p1285_p11 }
  0x72   : > { %1295 = shalt.err (!%p1292_p10)
}
  0x73   : > { %s1296_s26 = scalar_lea.vmem %s1588_s28, 256  ;;  %s1396_s17 = smov [#allocation5]  }
  0x74   : > { %p1297_p1 = scmp.ne.s32.totalorder %s1588_s28, %s1296_s26  ;;  %s1301_s8 = sshll.u32 %s1396_s17, 4  ;;  %s1302_s8 = int_to_ptr.vmem [resolvable:$false] %s1301_s8 }
  0x75   : > { %s1303_s14 = scalar_lea.vmem %s1302_s8, 512  ;;  %p1304_p6 = scmp.lt.s32.totalorder %s1588_s28, %s1302_s8 }
  0x76   : > { %p1299_p4 = pnand %p1297_p1, %p1283_p3  ;;  %p1305_p5 = scmp.lt.s32.totalorder %s1303_s14, %s1296_s26 }
  0x78   : > { %p1300_p2 = pneg %p1299_p4  ;;  %p1306_p12 = por %p1305_p5, %p1304_p6 }
  0x7a   : > { %p1307_p13 = pnand %p1306_p12, %p1300_p2 }
  0x7c   : > { %1310 = shalt.err (!%p1307_p13)
}
  0x7d   : > { %1126 = dma.hbm_to_vmem [thread:$0]  (!%p1765_p7), %s1586_s9, 256, %s1588_s28, %s1590_s27, %s1393_s11, %s1393_s11, %s1394_s13  }
  0x7e   : > { %p1766_p3 = scmp.ne.s32.totalorder %s1758_s7, 0 }
  0x7f   : > { %p1767_p11 = scmp.eq.s32.totalorder (!%p1766_p3), %s1450_s22, 0 }
  0x80   : > { %242 = sbr.rel (%p1766_p3) target bundleno = 1908 (0x774), region = 40 }
  0x87   : > { %1356 = dma.done.wait (%p1767_p11), [#allocation3], 256   ;;  %p1768_p0 = pmov %p1767_p11 }
  0x88   : > { %s248_s16 = sand.u32 1, %s1450_s22   ;;  %s1629_s10 = sand.u32 1, %s1381_s19  }
  0x89   : > { %1358 = vsyncadd (%p1768_p0), [#allocation3], 4294967040  ;;  %s981_s12 = sshll.u32 %s1629_s10, 4  ;;  %s249_s25 = scalar_lea.sflag [#allocation6], %s248_s16 }
  0x8a   : > { %s252_s2 = scalar_lea.vmem [#allocation5], %s981_s12  ;;  %p1769_p7 = scmp.ne.s32.totalorder %s1755_s29, 0 }
  0x8c   : > { %1360 = dma.done.wait (%p1769_p7), %s249_s25, 256  }
  0x8d   : > { %1362 = vsyncadd (%p1769_p7), %s249_s25, 4294967040  ;;  %p1770_p8 = pmov %p1768_p0 }
  0x8e   : > { %p1771_p9 = pmov %p1768_p0 }
  0x8f   : > { %1364 = dma.done.wait (%p1770_p8), [#allocation6], 256  }
  0x90   : > { %1366 = vsyncadd (%p1771_p9), [#allocation6], 4294967040  ;;  %p1772_p10 = pmov %p1768_p0 }
  0x91   : > { %p1773_p1 = pmov %p1768_p0 }
  0x92   : > { %1368 = dma.done.wait (%p1772_p10), [#allocation9], 512  }
  0x93   : > { %1370 = vsyncadd (%p1773_p1), [#allocation9], 4294966784  ;;  %vm294_vm0 = vcmask 130048   ;;  %v289_v0 = vld [vmem:[%s252_s2] sm:$0xff]  ;;  %v290_v1 = vld [vmem:[%s252_s2 + $0x8] sm:$0xff]  ;;  %v376_v10 = vlaneseq  ;;  %s1397_s11 = smov 112  }
  0x94   : > { %v287_v2 = vld [vmem:[#allocation2] sm:$0xff]  ;;  %v1073_v3 = vpack.c.bf16 %v290_v1, %v289_v0  ;;  %v292_v4 = vld [vmem:[#allocation7] sm:$0xff]  ;;  %v293_v5 = vld [vmem:[#allocation7 + $0x8] sm:$0xff]  ;;  %s984_s13 = sshll.u32 %s1629_s10, 2  ;;  %vm483_vm1 = vcmask 130052   ;;  %vm674_vm2 = vcmask 125952  }
  0x95   : > { %1035 = vmatprep.mubr.msk.f32.mxu0 %vm294_vm0, %v287_v2  ;;  %v1077_v6 = vpack.c.bf16 %v293_v5, %v292_v4  ;;  %v1645_v7 = vld [vmem:[#allocation2 + $0x8] sm:$0xff]  ;;  %v1652_v11 = vshrl.u32 %v376_v10, 7  ;;  %v1658_v13 = vld [vmem:[%s1742_s4] sm:$0x7]  ;;  %s1664_s9 = scalar_lea.vmem [#allocation10], %s984_s13  ;;  %v677_v50 = vld [vmem:[#allocation8 + $0x10] sm:$0xff] }
  0x96   : > { %1074 = vmatprep.subr.bf16.mxu0 %v1073_v3  ;;  %v485_v26 = vld [vmem:[#allocation8] sm:$0xff]  ;;  %v486_v27 = vld [vmem:[#allocation8 + $0x8] sm:$0xff]  ;;  %v678_v51 = vld [vmem:[#allocation8 + $0x18] sm:$0xff]  ;;  %s1003_s28 = sshll.u32 %s1450_s22, 6  ;;  %s869_s27 = sshll.u32 %s1664_s9, 4  ;;  %s1694_s27 = int_to_ptr.vmem [resolvable:$true] %s869_s27 }
  0x97   : > { %1076 = vmatpush3.bf16.msra.mxu0 %v1073_v3  ;;  %1078 = vmatprep.subr.bf16.mxu1 %v1077_v6  ;;  %v378_v12 = vsub.s32 0, %v1652_v11  ;;  %v1085_v28 = vpack.c.bf16 %v486_v27, %v485_v26  ;;  %v564_v37 = vsub.s32 1, %v1652_v11  ;;  %v1093_v52 = vpack.c.bf16 %v678_v51, %v677_v50  ;;  %s1692_s15 = scalar_lea.hbm %s1743_s5, %s1003_s28  ;;  %s856_s26 = scalar_lea.sflag [#allocation4], %s1629_s10 }
  0x98   : > { %1080 = vmatpush3.bf16.msra.mxu1 %v1077_v6  ;;  %v756_v0 = vsub.s32 2, %v1652_v11  ;;  %s1311_s17 = scalar_lea.vmem %s1694_s27, 64  ;;  %p1774_p2 = scmp.ne.s32.totalorder %s1756_s30, 0 }
  0x99   : > { %v379_v14 = vrot.slane %v1658_v13, %v378_v12  ;;  %1086 = vmatprep.subr.bf16.mxu1 %v1085_v28  ;;  %v565_v38 = vrot.slane %v1658_v13, %v564_v37  ;;  %p1312_p4 = scmp.ne.s32.totalorder %s1694_s27, %s1311_s17  ;;  %s1398_s22 = smov [#allocation10]  }
  0x9a   : > { %1036 = vmatmul.mubr.msk.f32.vlgmr.msra.gmra.mrb[0].mxu0 %vm294_vm0, %v1645_v7  ;;  %v757_v1 = vrot.slane %v1658_v13, %v756_v0  ;;  %s1315_s8 = sshll.u32 %s1398_s22, 4  ;;  %s1316_s8 = int_to_ptr.vmem [resolvable:$false] %s1315_s8 }
  0x9b   : > { %1049 = vmatprep.mubr.msk.f32.mxu0 %vm294_vm0, %v287_v2  ;;  %p1313_p6 = pnand %p1312_p4, %p1774_p2  ;;  %s1317_s14 = scalar_lea.vmem %s1316_s8, 128 }
  0x9c   : > { %p1318_p12 = scmp.lt.s32.totalorder %s1694_s27, %s1316_s8  ;;  %p1319_p13 = scmp.lt.s32.totalorder %s1317_s14, %s1311_s17 }
  0x9d   : > { %p1314_p5 = pneg %p1313_p6 }
  0x9e   : > { %p1320_p3 = por %p1319_p13, %p1318_p12 }
  0xa0   : > { %p1321_p11 = pnand %p1320_p3, %p1314_p5 }
 0x16d   : > { %v1037_v8 = vpop.f32.mrb[0].mxu0 }
 0x16e   : > { %v367_v9 = vpop.f32.mrb[1].mxu0 }
 0x16f   : > { %1042 = vmatprep.mubr.msk.f32.mxu1 %vm294_vm0, %v367_v9 }
 0x170   : > { %1043 = vmatmul.mubr.msk.f32.vlgmr.msra.gmra.mrb[0].mxu1 %vm294_vm0, %v1037_v8 }
 0x171   : > { %1088 = vmatpush3.bf16.msra.mxu1 %v1085_v28 }
 0x172   : > { %1094 = vmatprep.subr.bf16.mxu1 %v1093_v52 }
 0x243   : > { %v1044_v15 = vpop.f32.mrb[0].mxu1 }
 0x244   : > { %v458_v16 = vadd.f32 %v1044_v15, %v379_v14  ;;  %v452_v17 = vpop.f32.mrb[1].mxu1 }
 0x245   : > { %v453_v18 = vadd.f32 %v452_v17, %v379_v14 }
 0x246   : > { %v990_v19 = vmul.f32 -1.442695, %v458_v16 }
 0x247   : > { %v989_v20 = vmul.f32 -1.442695, %v453_v18 }
 0x248   : > { %1177 = vpow2.f32 %v990_v19 }
 0x249   : > { %1179 = vpow2.f32 %v989_v20 }
 0x252   : > { %v1178_v21 = vpop.eup %1177 }
 0x253   : > { %v1180_v22 = vpop.eup %1179  ;;  %v468_v24 = vadd.f32 1.0, %v1178_v21 }
 0x254   : > { %v467_v23 = vadd.f32 1.0, %v1180_v22 }
 0x256   : > { %1181 = vrcp.f32 %v467_v23 }
 0x257   : > { %1183 = vrcp.f32 %v468_v24 }
 0x260   : > { %v1182_v25 = vpop.eup %1181 }
 0x261   : > { %475 = vrot.lane.b32.xlu0 %v1182_v25, %s1397_s11  ;;  %v1184_v29 = vpop.eup %1183 }
 0x265   : > { %477 = vrot.lane.b32.xlu0 %v1184_v29, %s1397_s11 }
 0x2d3   : > { %v476_v30 = vpop.permute.xlu0 %475 }
 0x2d4   : > { %v481_v31 = vmul.f32 %v476_v30, %v453_v18 }
 0x2d6   : > { %484 = vst.msk [vmem:[%s1664_s9 - $0x4] sm:$0xf0] %vm483_vm1, %v481_v31 }
 0x2d7   : > { %v478_v32 = vpop.permute.xlu0 %477 }
 0x2d8   : > { %v482_v33 = vmul.f32 %v478_v32, %v458_v16 }
 0x2da   : > { %v1081_v34 = vpack.c.bf16 %v482_v33, %v481_v31 }
 0x2dc   : > { %1082 = vmatprep.subr.bf16.mxu0 %v1081_v34 }
 0x2dd   : > { %1084 = vmatpush3.bf16.msra.mxu0 %v1081_v34  ;;  %v669_v57 = vld [vmem:[%s1664_s9] sm:$0xf] }
 0x2e0   : > { %1050 = vmatmul.mubr.msk.f32.vlgmr.msra.gmra.mrb[2].mxu0 %vm294_vm0, %v1645_v7 }
 0x2e1   : > { %1063 = vmatprep.mubr.msk.f32.mxu0 %vm294_vm0, %v287_v2 }
 0x3b3   : > { %v1051_v35 = vpop.f32.mrb[2].mxu0 }
 0x3b4   : > { %v553_v36 = vpop.f32.mrb[3].mxu0 }
 0x3b5   : > { %1056 = vmatprep.mubr.msk.f32.mxu1 %vm294_vm0, %v553_v36 }
 0x3b6   : > { %1057 = vmatmul.mubr.msk.f32.vlgmr.msra.gmra.mrb[2].mxu1 %vm294_vm0, %v1051_v35 }
 0x3b7   : > { %1096 = vmatpush3.bf16.msra.mxu1 %v1093_v52 }
 0x489   : > { %v1058_v39 = vpop.f32.mrb[2].mxu1 }
 0x48a   : > { %v644_v40 = vadd.f32 %v1058_v39, %v565_v38  ;;  %v638_v41 = vpop.f32.mrb[3].mxu1 }
 0x48b   : > { %v639_v42 = vadd.f32 %v638_v41, %v565_v38 }
 0x48c   : > { %v996_v43 = vmul.f32 -1.442695, %v644_v40 }
 0x48d   : > { %v995_v44 = vmul.f32 -1.442695, %v639_v42 }
 0x48e   : > { %1185 = vpow2.f32 %v996_v43 }
 0x48f   : > { %1187 = vpow2.f32 %v995_v44 }
 0x498   : > { %v1186_v45 = vpop.eup %1185 }
 0x499   : > { %v1188_v46 = vpop.eup %1187  ;;  %v654_v48 = vadd.f32 1.0, %v1186_v45 }
 0x49a   : > { %v653_v47 = vadd.f32 1.0, %v1188_v46 }
 0x49c   : > { %1189 = vrcp.f32 %v653_v47 }
 0x49d   : > { %1191 = vrcp.f32 %v654_v48 }
 0x4a6   : > { %v1190_v49 = vpop.eup %1189 }
 0x4a7   : > { %661 = vrot.lane.b32.xlu1 %v1190_v49, %s1397_s11  ;;  %v1192_v53 = vpop.eup %1191 }
 0x4ab   : > { %663 = vrot.lane.b32.xlu1 %v1192_v53, %s1397_s11 }
 0x519   : > { %v662_v54 = vpop.permute.xlu1 %661 }
 0x51a   : > { %v667_v55 = vmul.f32 %v662_v54, %v639_v42 }
 0x51c   : > { %v671_v56 = vrot.slane %v667_v55, 4 }
 0x51d   : > { %v664_v58 = vpop.permute.xlu1 %663 }
 0x51e   : > { %v673_v59 = vmax.f32 %v669_v57, %v671_v56  ;;  %v668_v60 = vmul.f32 %v664_v58, %v644_v40 }
 0x520   : > { %675 = vst.msk [vmem:[%s1664_s9] sm:$0xf] %vm674_vm2, %v673_v59  ;;  %v1089_v61 = vpack.c.bf16 %v668_v60, %v667_v55 }
 0x522   : > { %1090 = vmatprep.subr.bf16.mxu0 %v1089_v61 }
 0x523   : > { %1092 = vmatpush3.bf16.msra.mxu0 %v1089_v61 }
 0x526   : > { %1064 = vmatmul.mubr.msk.f32.vlgmr.msra.gmra.mrb[4].mxu0 %vm294_vm0, %v1645_v7 }
 0x527   : > { %v849_v12 = vld [vmem:[%s1664_s9] sm:$0xf] }
 0x5f9   : > { %v1065_v62 = vpop.f32.mrb[4].mxu0 }
 0x5fa   : > { %v745_v63 = vpop.f32.mrb[5].mxu0 }
 0x5fb   : > { %1070 = vmatprep.mubr.msk.f32.mxu1 %vm294_vm0, %v745_v63 }
 0x5fc   : > { %1071 = vmatmul.mubr.msk.f32.vlgmr.msra.gmra.mrb[4].mxu1 %vm294_vm0, %v1065_v62 }
 0x6cf   : > { %v1072_v2 = vpop.f32.mrb[4].mxu1 }
 0x6d0   : > { %v830_v3 = vpop.f32.mrb[5].mxu1 }
 0x6d1   : > { %v831_v4 = vadd.f32 %v830_v3, %v757_v1 }
 0x6d3   : > { %v1001_v5 = vmul.f32 -1.442695, %v831_v4 }
 0x6d5   : > { %1193 = vpow2.f32 %v1001_v5 }
 0x6df   : > { %v1194_v6 = vpop.eup %1193 }
 0x6e0   : > { %v841_v7 = vadd.f32 1.0, %v1194_v6 }
 0x6e2   : > { %1195 = vrcp.f32 %v841_v7 }
 0x6ec   : > { %v1196_v8 = vpop.eup %1195 }
 0x6ed   : > { %845 = vrot.lane.b32.xlu0 %v1196_v8, %s1397_s11 }
 0x75f   : > { %v846_v9 = vpop.permute.xlu0 %845 }
 0x760   : > { %v848_v10 = vmul.f32 %v846_v9, %v831_v4 }
 0x762   : > { %v851_v11 = vrot.slane %v848_v10, 4 }
 0x764   : > { %v853_v13 = vmax.f32 %v849_v12, %v851_v11 }
 0x766   : > { %854 = vst.msk [vmem:[%s1664_s9] sm:$0xf] %vm674_vm2, %v853_v13 }
 0x767   : > { %1324 = shalt.err (!%p1321_p11)
}
 0x768   : > { %s1325_s16 = scalar_lea.hbm %s1692_s15, 64  ;;  %s1329_s25 = scalar_lea.hbm %s1743_s5, 128 }
 0x769   : > { %p1326_p0 = scmp.ne.s32.totalorder %s1692_s15, %s1325_s16  ;;  %p1330_p9 = scmp.lt.u32.totalorder %s1692_s15, %s1743_s5 }
 0x76a   : > { %p1331_p10 = scmp.lt.u32.totalorder %s1329_s25, %s1325_s16  ;;  %p1333_p4 = scmp.lt.u32.totalorder %s1325_s16, %s1692_s15 }
 0x76b   : > { %p1327_p7 = pnand %p1326_p0, %p1774_p2 }
 0x76c   : > { %p1332_p1 = por %p1331_p10, %p1330_p9 }
 0x76d   : > { %p1328_p8 = pneg %p1327_p7 }
 0x76e   : > { %p1334_p6 = por %p1333_p4, %p1332_p1 }
 0x770   : > { %p1335_p5 = pnand %p1334_p6, %p1328_p8 }
 0x772   : > { %1338 = shalt.err (!%p1335_p5)
}
 0x773   : > { %1111 = dma.vmem_to_hbm [thread:$0]  (%p1774_p2), %s1694_s27, 64, %s1692_s15, %s856_s26  }
 0x774 PF: > { %s881_s7 = sand.u32 1, %s1377_s18   ;;  %p1775_p12 = scmp.ne.s32.totalorder %s1757_s6, 0 }
 0x775   : > { %p1776_p13 = scmp.ge.s32.totalorder %s1389_s21, 2  ;;  %s882_s11 = scalar_lea.sflag [#allocation4], %s881_s7 }
 0x777   : > { %p1128_p3 = pnand %p1776_p13, %p1775_p12 }
 0x779   : > { %1372 = dma.done.wait (!%p1128_p3), %s882_s11, 64  }
 0x77a   : > { %1374 = vsyncadd (!%p1128_p3), %s882_s11, 4294967232  ;;  %s1777_s21 = sld [smem:[#allocation16_spill]]  ;;  %s1778_s13 = sld [smem:[#allocation17_spill]] }
 0x77b   : > { %s1779_s18 = smov %s1381_s19  ;;  %s1780_s19 = smov %s1385_s20 }
 0x780   : > { %p20_p11 = scmp.ge.s32.totalorder %s1777_s21, 4   ;;  %s1781_s20 = smov %s1778_s13 }
 0x782   :  { %22 = sbr.rel (!%p20_p11) target bundleno = 9 (0x9), region = 99 }
 0x789   :  { %887 = vsyncpa [#allocation3], 1 }
 0x78a   :  { %889 = vsyncpa [#allocation3 + $0x1], 1 }
 0x78b   :  { %890 = vsyncpa [#allocation6], 1 }
 0x78c   :  { %892 = vsyncpa [#allocation6 + $0x1], 1 }
 0x78d   :  { %893 = vsyncpa [#allocation9], 1 }
 0x78e   :  { %894 = vsyncpa [#allocation4], 1 }
 0x78f   :  { %896 = vsyncpa [#allocation4 + $0x1], 1 }

</bundles_post_ra>
